<compile_context>
chip_gen: v7x
topology: tpu7x:2x2x1
jax: 0.10.0
libtpu: 0.0.40
codegen_flags: <defaults>
</compile_context>

<pallas_src>
import numpy as np
import jax
import jax.numpy as jnp
from jax import lax
from jax.experimental import pallas as pl
from jax.experimental.pallas import tpu as pltpu


# ---------------- fixed slant basis (host-side numpy, same math as the torch module) ----------

def _block_diag(a, b):
    out = np.zeros((a.shape[0] + b.shape[0], a.shape[1] + b.shape[1]), dtype=np.float64)
    out[: a.shape[0], : a.shape[1]] = a
    out[a.shape[0]:, a.shape[1]:] = b
    return out


def _slant_matrix(size):
    """Reproduces SlantBlock.filter_from_matrix's inner `slant(min(size, 8))`."""
    n = min(size, 8)
    N = (2 ** (size - 1)).bit_length()
    S_1 = 1 / np.sqrt(2) * np.array([[1, 1], [1, -1]], dtype=np.float64)
    an = np.sqrt(2 * N ** 2 / (4 * N ** 2 - 1))
    bn = np.sqrt((N ** 2 - 1) / (4 * N ** 2 - 1))
    S_2 = 1 / np.sqrt(2) * np.array(
        [[1, 0, 1, 0], [an, bn, -an, bn], [0, 1, 0, -1], [-bn, an, bn, an]], dtype=np.float64
    )
    S_2 = S_2 @ _block_diag(S_1, S_1)
    if N == 2:
        return S_1
    if N == 4:
        return S_2
    S_prev = S_2
    i = 3
    while 3 <= i <= n:
        N = 2 ** i
        an = np.sqrt(3 * N ** 2 / (4 * N ** 2 - 1))
        bn = np.sqrt((N ** 2 - 1) / (4 * N ** 2 - 1))
        An1 = np.array([[1, 0], [an, bn]])
        An2 = np.array([[1, 0], [-an, bn]])
        Bn1 = np.array([[0, 1], [-bn, an]])
        Bn2 = np.array([[0, -1], [bn, an]])
        h = N // 2 - 2
        S_N = np.block(
            [
                [An1, np.zeros((2, h)), An2, np.zeros((2, h))],
                [np.zeros((h, 2)), np.eye(h), np.zeros((h, 2)), np.eye(h)],
                [Bn1, np.zeros((2, h)), Bn2, np.zeros((2, h))],
                [np.zeros((h, 2)), np.eye(h), np.zeros((h, 2)), -np.eye(h)],
            ]
        )
        S_N = 1 / np.sqrt(2) * (S_N @ _block_diag(S_prev, S_prev))
        S_prev = S_N
        i += 1
    return S_prev


def slant_patch_basis(kernel_size):
    """(K2, K2) matrix B with B[q, m] = value of slant filter m at flattened patch offset q."""
    s = _slant_matrix(kernel_size)
    K = kernel_size
    K2 = K * K
    B = np.zeros((K2, K2), dtype=np.float32)
    for i in range(K):
        for j in range(K):
            B[:, i * K + j] = np.outer(s[i, :K], s[j, :K]).reshape(-1).astype(np.float32)
    return B


def slant_filter_bank(kernel_size, input_channels):
    """(C*K*K, 1, K, K) float32 grouped-conv filter bank (torch layout) -- used by the reference."""
    K = kernel_size
    K2 = K * K
    base = slant_patch_basis(K).T.reshape(K2, K, K)  # base[m] = filter m as a KxK patch
    fb = np.tile(base[None], (input_channels, 1, 1, 1)).reshape(-1, 1, K, K)
    return fb.astype(np.float32)


# ---------------- Pallas kernel ----------------

def make_slant_kernel(K, Wp, L, srow):
    """Per-grid-step kernel.  `srow` (K, K) holds the separable slant row basis s[:K, :K];
    its entries are baked in as compile-time scalars (zero terms pruned, unit terms add-only)."""
    Lu = L + (K - 1)                               # row-pass windows need K-1 extra lanes
    row_off = [kh * Wp for kh in range(K)]         # vertical patch taps = big lane shifts
    res_off = (K // 2) * Wp + (K // 2)             # center tap == identity residual
    coef = [[float(srow[i, k]) for k in range(K)] for i in range(K)]

    def _combine(parts, coeffs):
        """sum_k coeffs[k] * parts[k] with compile-time zero pruning / unit-coefficient skip."""
        acc = None
        for c, p in zip(coeffs, parts):
            if c == 0.0:
                continue
            term = p if c == 1.0 else c * p
            acc = term if acc is None else acc + term
        if acc is None:
            acc = jnp.zeros_like(parts[0])
        return acc

    def kernel(x_ref, sc_ref, sh_ref, w_ref, out_ref):
        # x_ref  : (B*C, Hp*Wp)      fp32 zero-padded slab, B images stacked on sublanes
        # sc_ref : (K2, B*C, 1)      folded BN scale, regrouped by filter index m
        # sh_ref : (K2, B*C, 1)      folded BN shift
        # w_ref  : (B*C_out, K2*B*C) stacked block-diagonal 1x1-conv weight
        # out_ref: (B*C_out, L)      lane-dense feature-major output slab

        # --- separable slant transform, pass 1 (vertical / kh): ref-sliced windows, VPU FMAs
        xw = [x_ref[:, off:off + Lu] for off in row_off]          # K x (B*C, L+K-1)
        u = [_combine(xw, coef[i]) for i in range(K)]             # K intermediates

        # --- pass 2 (horizontal / kw): small lane shifts of u_i, fused with folded BN + ReLU.
        # Activations are stacked along sublanes so the 1x1 conv is a single MXU matmul.
        a_parts = []
        for i in range(K):
            uw = [u[i][:, kw:kw + L] for kw in range(K)]          # shifts reused by K filters
            for j in range(K):
                m = i * K + j
                t_m = _combine(uw, coef[j])                       # (B*C, L) transform map m
                a_parts.append(jnp.maximum(t_m * sc_ref[m] + sh_ref[m], 0.0))
        A = jnp.concatenate(a_parts, axis=0)                      # (K2*B*C, L)

        # --- 1x1 conv: ONE stacked (B*C_out, K2*B*C) @ (K2*B*C, L) dot, fp32 accumulation.
        y = jnp.dot(w_ref[...], A.astype(w_ref.dtype),
                    preferred_element_type=jnp.float32)           # (B*C_out, L)

        # --- identity residual shortcut = center tap of the padded slab (fp32), final ReLU.
        res = x_ref[:, res_off:res_off + L]
        out_ref[...] = jnp.maximum(y + res, 0.0)

    return kernel


def _pick_images_per_step(N, C):
    """Largest divisor B of N keeping >= 2 grid steps (v7x two-TC sharding), preferring the
    smallest B that fills >= 8 sublanes (B*C >= 8)."""
    best = 1
    for B in range(1, N + 1):
        if N % B:
            continue
        if N // B < 2 and N >= 2:
            break                      # steps only shrink as B grows
        best = B
        if B * C >= 8:
            break
    return best


def slant_block_forward(x, params, kernel_size=3, images_per_step=None,
                        matmul_dtype=jnp.float32):
    """Inference forward of SlantBlock (bn=True, bias=False, use_res=True, identity shortcut,
    stride=1, padding=K//2).  x is NCHW float32; output is NCHW float32."""
    N, C, H, W = x.shape
    K = kernel_size
    K2 = K * K
    F = C * K2
    C_out = params["w1"].shape[0]
    assert params["w1"].shape[1] == F, "w1 must have shape (C_out, C*K*K)"
    assert C_out == C, "identity residual shortcut requires input_channels == output_channels"

    B = images_per_step if images_per_step is not None else _pick_images_per_step(N, C)
    assert N % B == 0, "images_per_step must divide the batch"
    G = N // B

    pad = K // 2
    Hp = H + 2 * pad + 1        # one extra bottom pad row so every shifted window stays in bounds
    Wp = W + 2 * pad
    P = Hp * Wp
    L = H * Wp                  # per-image output lane extent (valid rows at padded width)

    # Host glue: zero-pad, flatten spatial dims onto lanes, stack B images onto sublanes.
    # NCHW is already feature-major, so this is a pad + contiguous reshape (no transpose).
    xp = jnp.pad(x.astype(jnp.float32), ((0, 0), (0, 0), (pad, pad + 1), (pad, pad)))
    xflat = xp.reshape(G, B * C, P)

    # Fold inference BatchNorm (running stats) into a per-row affine, regrouped by filter
    # index m and tiled over the B images sharing each grid step.
    scale = params["gamma"] / jnp.sqrt(params["running_var"] + 1e-5)          # (F,)
    shift = params["beta"] - params["running_mean"] * scale                   # (F,)
    sc = jnp.transpose(scale.reshape(C, K2))                                  # (K2, C)
    sh = jnp.transpose(shift.reshape(C, K2))
    sc_m = jnp.tile(sc[:, None, :], (1, B, 1)).reshape(K2, B * C, 1).astype(jnp.float32)
    sh_m = jnp.tile(sh[:, None, :], (1, B, 1)).reshape(K2, B * C, 1).astype(jnp.float32)

    # Stacked block-diagonal 1x1-conv weight:
    #   Wstack[b*C_out + o, m*B*C + b'*C + c] = (b == b') * w1[o, c*K2 + m]
    w1_moc = jnp.transpose(params["w1"].reshape(C_out, C, K2), (2, 0, 1))     # (K2, C_out, C)
    eyeB = jnp.eye(B, dtype=jnp.float32)
    Wstack = jnp.einsum("xy,moc->xomyc", eyeB, w1_moc).reshape(B * C_out, K2 * B * C)
    Wstack = Wstack.astype(matmul_dtype)

    srow = np.asarray(_slant_matrix(K))[:K, :K]   # separable row basis -> compile-time scalars

    out_fm = pl.pallas_call(
        make_slant_kernel(K, Wp, L, srow),
        out_shape=jax.ShapeDtypeStruct((G, B * C_out, L), jnp.float32),
        grid_spec=pltpu.PrefetchScalarGridSpec(
            num_scalar_prefetch=0,
            grid=(G,),                                     # B images per step, parallel batch
            in_specs=[
                pl.BlockSpec((None, B * C, P), lambda g: (g, 0, 0)),        # padded slab
                pl.BlockSpec((K2, B * C, 1), lambda g: (0, 0, 0)),          # BN scale (const)
                pl.BlockSpec((K2, B * C, 1), lambda g: (0, 0, 0)),          # BN shift (const)
                pl.BlockSpec((B * C_out, K2 * B * C), lambda g: (0, 0)),    # 1x1 weight (const)
            ],
            out_specs=pl.BlockSpec((None, B * C_out, L), lambda g: (g, 0, 0)),
        ),
        compiler_params=pltpu.CompilerParams(
            dimension_semantics=("parallel",),             # shards steps across v7x's 2 cores
        ),
    )(xflat, sc_m, sh_m, Wstack)

    # Strip the padded columns and return NCHW (reshape + slice only, no transpose).
    return out_fm.reshape(N, C_out, H, Wp)[:, :, :, :W]


# ---------------- pure-JAX reference (for correctness check) ----------------

def reference_forward(x, filter_bank, params):
    fb = jnp.asarray(filter_bank)
    C = x.shape[1]
    t = lax.conv_general_dilated(
        x, fb, window_strides=(1, 1), padding=((1, 1), (1, 1)),
        feature_group_count=C, dimension_numbers=("NCHW", "OIHW", "NCHW"))
    scale = params["gamma"] / jnp.sqrt(params["running_var"] + 1e-5)
    shift = params["beta"] - params["running_mean"] * scale
    a = jnp.maximum(t * scale[None, :, None, None] + shift[None, :, None, None], 0.0)
    w1 = params["w1"][:, :, None, None]
    y = lax.conv_general_dilated(
        a, w1, (1, 1), ((0, 0), (0, 0)), dimension_numbers=("NCHW", "OIHW", "NCHW"))
    return jnp.maximum(y + x, 0.0)


if __name__ == "__main__":
    # Config mirroring SlantBlock defaults: kernel_size=3, padding=1, stride=1, bn=True,
    # dropout=False, add_noise=False, alpha_root=None, lmbda=None, diag=False, bias=False,
    # use_res=True with input_channels == output_channels -> identity shortcut.
    # batch=4 so 2 images pack onto the sublane axis per step while the grid keeps 2 steps.
    N, C_in, C_out, H, W, K = 4, 4, 4, 16, 16, 3
    K2 = K * K
    F = C_in * K2

    key = jax.random.PRNGKey(0)
    kx, kg, kb, kw = jax.random.split(key, 4)
    x = jax.random.normal(kx, (N, C_in, H, W), dtype=jnp.float32)

    fb = slant_filter_bank(K, C_in)                       # (C*K2, 1, K, K) fixed slant filters
    params = dict(
        gamma=1.0 + 0.1 * jax.random.normal(kg, (F,), dtype=jnp.float32),
        beta=0.1 * jax.random.normal(kb, (F,), dtype=jnp.float32),
        running_mean=jnp.zeros((F,), jnp.float32),
        running_var=jnp.ones((F,), jnp.float32),
        w1=(1.0 / np.sqrt(F)) * jax.random.normal(kw, (C_out, F), dtype=jnp.float32),
    )

    ref = reference_forward(x, fb, params)

    # fp32 end-to-end (safe on v5e/v6e/v7x; the kernel is VALU-bound, not HBM-bound, here).
    out = jax.block_until_ready(slant_block_forward(x, params, kernel_size=K))
    assert out.shape == (N, C_out, H, W)
    if not bool(jnp.allclose(out, ref, rtol=2e-2, atol=2e-2)):
        raise AssertionError(
            f"fp32 Pallas output mismatch, max abs diff = {float(jnp.max(jnp.abs(out - ref)))}")

    # Optional bf16 matmul-operand path: only the single stacked dot's operands are cast
    # (once); the slab, transform, BN/ReLU epilogue and residual stay fp32 on every chip.
    out_bf16 = jax.block_until_ready(
        slant_block_forward(x, params, kernel_size=K, matmul_dtype=jnp.bfloat16))
    assert out_bf16.shape == (N, C_out, H, W)
    if not bool(jnp.allclose(out_bf16, ref, rtol=5e-2, atol=5e-2)):
        raise AssertionError(
            f"bf16 Pallas output mismatch, max abs diff = {float(jnp.max(jnp.abs(out_bf16 - ref)))}")

    print("KERNEL_OK")
</pallas_src>

<mosaic_0001>
module attributes {stable_mosaic.version = 11 : i64} {
  func.func @kernel(%arg0: i32, %arg1: memref<1x8x342xf32, #tpu.memory_space<vmem>>, %arg2: memref<9x8x1xf32, #tpu.memory_space<vmem>>, %arg3: memref<9x8x1xf32, #tpu.memory_space<vmem>>, %arg4: memref<8x72xf32, #tpu.memory_space<vmem>>, %arg5: memref<1x8x288xf32, #tpu.memory_space<vmem>>) attributes {dimension_semantics = [#tpu.dimension_semantics<parallel>], iteration_bounds = array<i64: 2>, scalar_prefetch = 0 : i64, scratch_operands = 0 : i64, tpu.core_type = #tpu.core_type<tc>, window_params = [{transform_indices = @transform_0, window_bounds = array<i64: 1, 8, 342>}, {pipeline_mode = #tpu.pipeline_mode<synchronous>, transform_indices = @transform_1, window_bounds = array<i64: 9, 8, 1>}, {pipeline_mode = #tpu.pipeline_mode<synchronous>, transform_indices = @transform_2, window_bounds = array<i64: 9, 8, 1>}, {pipeline_mode = #tpu.pipeline_mode<synchronous>, transform_indices = @transform_3, window_bounds = array<i64: 8, 72>}, {transform_indices = @transform_4, window_bounds = array<i64: 1, 8, 288>}]} {
    %c0 = arith.constant 0 : index
    %c0_0 = arith.constant 0 : index
    %c0_1 = arith.constant 0 : index
    %0 = vector.load %arg1[%c0, %c0_0, %c0_1] : memref<1x8x342xf32, #tpu.memory_space<vmem>>, vector<1x8x290xf32>
    %1 = vector.shape_cast %0 : vector<1x8x290xf32> to vector<8x290xf32>
    %c0_2 = arith.constant 0 : index
    %c0_3 = arith.constant 0 : index
    %c18 = arith.constant 18 : index
    %2 = vector.load %arg1[%c0_2, %c0_3, %c18] : memref<1x8x342xf32, #tpu.memory_space<vmem>>, vector<1x8x290xf32>
    %3 = vector.shape_cast %2 : vector<1x8x290xf32> to vector<8x290xf32>
    %c0_4 = arith.constant 0 : index
    %c0_5 = arith.constant 0 : index
    %c36 = arith.constant 36 : index
    %4 = vector.load %arg1[%c0_4, %c0_5, %c36] : memref<1x8x342xf32, #tpu.memory_space<vmem>>, vector<1x8x290xf32>
    %5 = vector.shape_cast %4 : vector<1x8x290xf32> to vector<8x290xf32>
    %cst = arith.constant 0.353553385 : f32
    %6 = vector.broadcast %cst : f32 to vector<8x290xf32>
    %7 = arith.mulf %6, %1 : vector<8x290xf32>
    %cst_6 = arith.constant 0.353553385 : f32
    %8 = vector.broadcast %cst_6 : f32 to vector<8x290xf32>
    %9 = arith.mulf %8, %3 : vector<8x290xf32>
    %10 = arith.addf %7, %9 : vector<8x290xf32>
    %cst_7 = arith.constant 0.353553385 : f32
    %11 = vector.broadcast %cst_7 : f32 to vector<8x290xf32>
    %12 = arith.mulf %11, %5 : vector<8x290xf32>
    %13 = arith.addf %10, %12 : vector<8x290xf32>
    %cst_8 = arith.constant 5.168280e-01 : f32
    %14 = vector.broadcast %cst_8 : f32 to vector<8x290xf32>
    %15 = arith.mulf %14, %1 : vector<8x290xf32>
    %cst_9 = arith.constant 0.348794401 : f32
    %16 = vector.broadcast %cst_9 : f32 to vector<8x290xf32>
    %17 = arith.mulf %16, %3 : vector<8x290xf32>
    %18 = arith.addf %15, %17 : vector<8x290xf32>
    %cst_10 = arith.constant 0.264777601 : f32
    %19 = vector.broadcast %cst_10 : f32 to vector<8x290xf32>
    %20 = arith.mulf %19, %5 : vector<8x290xf32>
    %21 = arith.addf %18, %20 : vector<8x290xf32>
    %cst_11 = arith.constant 0.353553385 : f32
    %22 = vector.broadcast %cst_11 : f32 to vector<8x290xf32>
    %23 = arith.mulf %22, %1 : vector<8x290xf32>
    %cst_12 = arith.constant -0.353553385 : f32
    %24 = vector.broadcast %cst_12 : f32 to vector<8x290xf32>
    %25 = arith.mulf %24, %3 : vector<8x290xf32>
    %26 = arith.addf %23, %25 : vector<8x290xf32>
    %cst_13 = arith.constant -0.353553385 : f32
    %27 = vector.broadcast %cst_13 : f32 to vector<8x290xf32>
    %28 = arith.mulf %27, %5 : vector<8x290xf32>
    %29 = arith.addf %26, %28 : vector<8x290xf32>
    %30 = vector.extract_strided_slice %13 {offsets = [0, 0], sizes = [8, 288], strides = [1, 1]} : vector<8x290xf32> to vector<8x288xf32>
    %31 = vector.extract_strided_slice %13 {offsets = [0, 1], sizes = [8, 288], strides = [1, 1]} : vector<8x290xf32> to vector<8x288xf32>
    %32 = vector.extract_strided_slice %13 {offsets = [0, 2], sizes = [8, 288], strides = [1, 1]} : vector<8x290xf32> to vector<8x288xf32>
    %cst_14 = arith.constant 0.353553385 : f32
    %33 = vector.broadcast %cst_14 : f32 to vector<8x288xf32>
    %34 = arith.mulf %33, %30 : vector<8x288xf32>
    %cst_15 = arith.constant 0.353553385 : f32
    %35 = vector.broadcast %cst_15 : f32 to vector<8x288xf32>
    %36 = arith.mulf %35, %31 : vector<8x288xf32>
    %37 = arith.addf %34, %36 : vector<8x288xf32>
    %cst_16 = arith.constant 0.353553385 : f32
    %38 = vector.broadcast %cst_16 : f32 to vector<8x288xf32>
    %39 = arith.mulf %38, %32 : vector<8x288xf32>
    %40 = arith.addf %37, %39 : vector<8x288xf32>
    %c0_17 = arith.constant 0 : index
    %c0_18 = arith.constant 0 : index
    %c0_19 = arith.constant 0 : index
    %41 = vector.load %arg2[%c0_17, %c0_18, %c0_19] : memref<9x8x1xf32, #tpu.memory_space<vmem>>, vector<1x8x1xf32>
    %42 = vector.shape_cast %41 : vector<1x8x1xf32> to vector<8x1xf32>
    %43 = vector.broadcast %42 : vector<8x1xf32> to vector<8x288xf32>
    %44 = arith.mulf %40, %43 : vector<8x288xf32>
    %c0_20 = arith.constant 0 : index
    %c0_21 = arith.constant 0 : index
    %c0_22 = arith.constant 0 : index
    %45 = vector.load %arg3[%c0_20, %c0_21, %c0_22] : memref<9x8x1xf32, #tpu.memory_space<vmem>>, vector<1x8x1xf32>
    %46 = vector.shape_cast %45 : vector<1x8x1xf32> to vector<8x1xf32>
    %47 = vector.broadcast %46 : vector<8x1xf32> to vector<8x288xf32>
    %48 = arith.addf %44, %47 : vector<8x288xf32>
    %cst_23 = arith.constant 0.000000e+00 : f32
    %49 = vector.broadcast %cst_23 : f32 to vector<8x288xf32>
    %50 = arith.maximumf %48, %49 : vector<8x288xf32>
    %cst_24 = arith.constant 5.168280e-01 : f32
    %51 = vector.broadcast %cst_24 : f32 to vector<8x288xf32>
    %52 = arith.mulf %51, %30 : vector<8x288xf32>
    %cst_25 = arith.constant 0.348794401 : f32
    %53 = vector.broadcast %cst_25 : f32 to vector<8x288xf32>
    %54 = arith.mulf %53, %31 : vector<8x288xf32>
    %55 = arith.addf %52, %54 : vector<8x288xf32>
    %cst_26 = arith.constant 0.264777601 : f32
    %56 = vector.broadcast %cst_26 : f32 to vector<8x288xf32>
    %57 = arith.mulf %56, %32 : vector<8x288xf32>
    %58 = arith.addf %55, %57 : vector<8x288xf32>
    %c1 = arith.constant 1 : index
    %c0_27 = arith.constant 0 : index
    %c0_28 = arith.constant 0 : index
    %59 = vector.load %arg2[%c1, %c0_27, %c0_28] : memref<9x8x1xf32, #tpu.memory_space<vmem>>, vector<1x8x1xf32>
    %60 = vector.shape_cast %59 : vector<1x8x1xf32> to vector<8x1xf32>
    %61 = vector.broadcast %60 : vector<8x1xf32> to vector<8x288xf32>
    %62 = arith.mulf %58, %61 : vector<8x288xf32>
    %c1_29 = arith.constant 1 : index
    %c0_30 = arith.constant 0 : index
    %c0_31 = arith.constant 0 : index
    %63 = vector.load %arg3[%c1_29, %c0_30, %c0_31] : memref<9x8x1xf32, #tpu.memory_space<vmem>>, vector<1x8x1xf32>
    %64 = vector.shape_cast %63 : vector<1x8x1xf32> to vector<8x1xf32>
    %65 = vector.broadcast %64 : vector<8x1xf32> to vector<8x288xf32>
    %66 = arith.addf %62, %65 : vector<8x288xf32>
    %cst_32 = arith.constant 0.000000e+00 : f32
    %67 = vector.broadcast %cst_32 : f32 to vector<8x288xf32>
    %68 = arith.maximumf %66, %67 : vector<8x288xf32>
    %cst_33 = arith.constant 0.353553385 : f32
    %69 = vector.broadcast %cst_33 : f32 to vector<8x288xf32>
    %70 = arith.mulf %69, %30 : vector<8x288xf32>
    %cst_34 = arith.constant -0.353553385 : f32
    %71 = vector.broadcast %cst_34 : f32 to vector<8x288xf32>
    %72 = arith.mulf %71, %31 : vector<8x288xf32>
    %73 = arith.addf %70, %72 : vector<8x288xf32>
    %cst_35 = arith.constant -0.353553385 : f32
    %74 = vector.broadcast %cst_35 : f32 to vector<8x288xf32>
    %75 = arith.mulf %74, %32 : vector<8x288xf32>
    %76 = arith.addf %73, %75 : vector<8x288xf32>
    %c2 = arith.constant 2 : index
    %c0_36 = arith.constant 0 : index
    %c0_37 = arith.constant 0 : index
    %77 = vector.load %arg2[%c2, %c0_36, %c0_37] : memref<9x8x1xf32, #tpu.memory_space<vmem>>, vector<1x8x1xf32>
    %78 = vector.shape_cast %77 : vector<1x8x1xf32> to vector<8x1xf32>
    %79 = vector.broadcast %78 : vector<8x1xf32> to vector<8x288xf32>
    %80 = arith.mulf %76, %79 : vector<8x288xf32>
    %c2_38 = arith.constant 2 : index
    %c0_39 = arith.constant 0 : index
    %c0_40 = arith.constant 0 : index
    %81 = vector.load %arg3[%c2_38, %c0_39, %c0_40] : memref<9x8x1xf32, #tpu.memory_space<vmem>>, vector<1x8x1xf32>
    %82 = vector.shape_cast %81 : vector<1x8x1xf32> to vector<8x1xf32>
    %83 = vector.broadcast %82 : vector<8x1xf32> to vector<8x288xf32>
    %84 = arith.addf %80, %83 : vector<8x288xf32>
    %cst_41 = arith.constant 0.000000e+00 : f32
    %85 = vector.broadcast %cst_41 : f32 to vector<8x288xf32>
    %86 = arith.maximumf %84, %85 : vector<8x288xf32>
    %87 = vector.extract_strided_slice %21 {offsets = [0, 0], sizes = [8, 288], strides = [1, 1]} : vector<8x290xf32> to vector<8x288xf32>
    %88 = vector.extract_strided_slice %21 {offsets = [0, 1], sizes = [8, 288], strides = [1, 1]} : vector<8x290xf32> to vector<8x288xf32>
    %89 = vector.extract_strided_slice %21 {offsets = [0, 2], sizes = [8, 288], strides = [1, 1]} : vector<8x290xf32> to vector<8x288xf32>
    %cst_42 = arith.constant 0.353553385 : f32
    %90 = vector.broadcast %cst_42 : f32 to vector<8x288xf32>
    %91 = arith.mulf %90, %87 : vector<8x288xf32>
    %cst_43 = arith.constant 0.353553385 : f32
    %92 = vector.broadcast %cst_43 : f32 to vector<8x288xf32>
    %93 = arith.mulf %92, %88 : vector<8x288xf32>
    %94 = arith.addf %91, %93 : vector<8x288xf32>
    %cst_44 = arith.constant 0.353553385 : f32
    %95 = vector.broadcast %cst_44 : f32 to vector<8x288xf32>
    %96 = arith.mulf %95, %89 : vector<8x288xf32>
    %97 = arith.addf %94, %96 : vector<8x288xf32>
    %c3 = arith.constant 3 : index
    %c0_45 = arith.constant 0 : index
    %c0_46 = arith.constant 0 : index
    %98 = vector.load %arg2[%c3, %c0_45, %c0_46] : memref<9x8x1xf32, #tpu.memory_space<vmem>>, vector<1x8x1xf32>
    %99 = vector.shape_cast %98 : vector<1x8x1xf32> to vector<8x1xf32>
    %100 = vector.broadcast %99 : vector<8x1xf32> to vector<8x288xf32>
    %101 = arith.mulf %97, %100 : vector<8x288xf32>
    %c3_47 = arith.constant 3 : index
    %c0_48 = arith.constant 0 : index
    %c0_49 = arith.constant 0 : index
    %102 = vector.load %arg3[%c3_47, %c0_48, %c0_49] : memref<9x8x1xf32, #tpu.memory_space<vmem>>, vector<1x8x1xf32>
    %103 = vector.shape_cast %102 : vector<1x8x1xf32> to vector<8x1xf32>
    %104 = vector.broadcast %103 : vector<8x1xf32> to vector<8x288xf32>
    %105 = arith.addf %101, %104 : vector<8x288xf32>
    %cst_50 = arith.constant 0.000000e+00 : f32
    %106 = vector.broadcast %cst_50 : f32 to vector<8x288xf32>
    %107 = arith.maximumf %105, %106 : vector<8x288xf32>
    %cst_51 = arith.constant 5.168280e-01 : f32
    %108 = vector.broadcast %cst_51 : f32 to vector<8x288xf32>
    %109 = arith.mulf %108, %87 : vector<8x288xf32>
    %cst_52 = arith.constant 0.348794401 : f32
    %110 = vector.broadcast %cst_52 : f32 to vector<8x288xf32>
    %111 = arith.mulf %110, %88 : vector<8x288xf32>
    %112 = arith.addf %109, %111 : vector<8x288xf32>
    %cst_53 = arith.constant 0.264777601 : f32
    %113 = vector.broadcast %cst_53 : f32 to vector<8x288xf32>
    %114 = arith.mulf %113, %89 : vector<8x288xf32>
    %115 = arith.addf %112, %114 : vector<8x288xf32>
    %c4 = arith.constant 4 : index
    %c0_54 = arith.constant 0 : index
    %c0_55 = arith.constant 0 : index
    %116 = vector.load %arg2[%c4, %c0_54, %c0_55] : memref<9x8x1xf32, #tpu.memory_space<vmem>>, vector<1x8x1xf32>
    %117 = vector.shape_cast %116 : vector<1x8x1xf32> to vector<8x1xf32>
    %118 = vector.broadcast %117 : vector<8x1xf32> to vector<8x288xf32>
    %119 = arith.mulf %115, %118 : vector<8x288xf32>
    %c4_56 = arith.constant 4 : index
    %c0_57 = arith.constant 0 : index
    %c0_58 = arith.constant 0 : index
    %120 = vector.load %arg3[%c4_56, %c0_57, %c0_58] : memref<9x8x1xf32, #tpu.memory_space<vmem>>, vector<1x8x1xf32>
    %121 = vector.shape_cast %120 : vector<1x8x1xf32> to vector<8x1xf32>
    %122 = vector.broadcast %121 : vector<8x1xf32> to vector<8x288xf32>
    %123 = arith.addf %119, %122 : vector<8x288xf32>
    %cst_59 = arith.constant 0.000000e+00 : f32
    %124 = vector.broadcast %cst_59 : f32 to vector<8x288xf32>
    %125 = arith.maximumf %123, %124 : vector<8x288xf32>
    %cst_60 = arith.constant 0.353553385 : f32
    %126 = vector.broadcast %cst_60 : f32 to vector<8x288xf32>
    %127 = arith.mulf %126, %87 : vector<8x288xf32>
    %cst_61 = arith.constant -0.353553385 : f32
    %128 = vector.broadcast %cst_61 : f32 to vector<8x288xf32>
    %129 = arith.mulf %128, %88 : vector<8x288xf32>
    %130 = arith.addf %127, %129 : vector<8x288xf32>
    %cst_62 = arith.constant -0.353553385 : f32
    %131 = vector.broadcast %cst_62 : f32 to vector<8x288xf32>
    %132 = arith.mulf %131, %89 : vector<8x288xf32>
    %133 = arith.addf %130, %132 : vector<8x288xf32>
    %c5 = arith.constant 5 : index
    %c0_63 = arith.constant 0 : index
    %c0_64 = arith.constant 0 : index
    %134 = vector.load %arg2[%c5, %c0_63, %c0_64] : memref<9x8x1xf32, #tpu.memory_space<vmem>>, vector<1x8x1xf32>
    %135 = vector.shape_cast %134 : vector<1x8x1xf32> to vector<8x1xf32>
    %136 = vector.broadcast %135 : vector<8x1xf32> to vector<8x288xf32>
    %137 = arith.mulf %133, %136 : vector<8x288xf32>
    %c5_65 = arith.constant 5 : index
    %c0_66 = arith.constant 0 : index
    %c0_67 = arith.constant 0 : index
    %138 = vector.load %arg3[%c5_65, %c0_66, %c0_67] : memref<9x8x1xf32, #tpu.memory_space<vmem>>, vector<1x8x1xf32>
    %139 = vector.shape_cast %138 : vector<1x8x1xf32> to vector<8x1xf32>
    %140 = vector.broadcast %139 : vector<8x1xf32> to vector<8x288xf32>
    %141 = arith.addf %137, %140 : vector<8x288xf32>
    %cst_68 = arith.constant 0.000000e+00 : f32
    %142 = vector.broadcast %cst_68 : f32 to vector<8x288xf32>
    %143 = arith.maximumf %141, %142 : vector<8x288xf32>
    %144 = vector.extract_strided_slice %29 {offsets = [0, 0], sizes = [8, 288], strides = [1, 1]} : vector<8x290xf32> to vector<8x288xf32>
    %145 = vector.extract_strided_slice %29 {offsets = [0, 1], sizes = [8, 288], strides = [1, 1]} : vector<8x290xf32> to vector<8x288xf32>
    %146 = vector.extract_strided_slice %29 {offsets = [0, 2], sizes = [8, 288], strides = [1, 1]} : vector<8x290xf32> to vector<8x288xf32>
    %cst_69 = arith.constant 0.353553385 : f32
    %147 = vector.broadcast %cst_69 : f32 to vector<8x288xf32>
    %148 = arith.mulf %147, %144 : vector<8x288xf32>
    %cst_70 = arith.constant 0.353553385 : f32
    %149 = vector.broadcast %cst_70 : f32 to vector<8x288xf32>
    %150 = arith.mulf %149, %145 : vector<8x288xf32>
    %151 = arith.addf %148, %150 : vector<8x288xf32>
    %cst_71 = arith.constant 0.353553385 : f32
    %152 = vector.broadcast %cst_71 : f32 to vector<8x288xf32>
    %153 = arith.mulf %152, %146 : vector<8x288xf32>
    %154 = arith.addf %151, %153 : vector<8x288xf32>
    %c6 = arith.constant 6 : index
    %c0_72 = arith.constant 0 : index
    %c0_73 = arith.constant 0 : index
    %155 = vector.load %arg2[%c6, %c0_72, %c0_73] : memref<9x8x1xf32, #tpu.memory_space<vmem>>, vector<1x8x1xf32>
    %156 = vector.shape_cast %155 : vector<1x8x1xf32> to vector<8x1xf32>
    %157 = vector.broadcast %156 : vector<8x1xf32> to vector<8x288xf32>
    %158 = arith.mulf %154, %157 : vector<8x288xf32>
    %c6_74 = arith.constant 6 : index
    %c0_75 = arith.constant 0 : index
    %c0_76 = arith.constant 0 : index
    %159 = vector.load %arg3[%c6_74, %c0_75, %c0_76] : memref<9x8x1xf32, #tpu.memory_space<vmem>>, vector<1x8x1xf32>
    %160 = vector.shape_cast %159 : vector<1x8x1xf32> to vector<8x1xf32>
    %161 = vector.broadcast %160 : vector<8x1xf32> to vector<8x288xf32>
    %162 = arith.addf %158, %161 : vector<8x288xf32>
    %cst_77 = arith.constant 0.000000e+00 : f32
    %163 = vector.broadcast %cst_77 : f32 to vector<8x288xf32>
    %164 = arith.maximumf %162, %163 : vector<8x288xf32>
    %cst_78 = arith.constant 5.168280e-01 : f32
    %165 = vector.broadcast %cst_78 : f32 to vector<8x288xf32>
    %166 = arith.mulf %165, %144 : vector<8x288xf32>
    %cst_79 = arith.constant 0.348794401 : f32
    %167 = vector.broadcast %cst_79 : f32 to vector<8x288xf32>
    %168 = arith.mulf %167, %145 : vector<8x288xf32>
    %169 = arith.addf %166, %168 : vector<8x288xf32>
    %cst_80 = arith.constant 0.264777601 : f32
    %170 = vector.broadcast %cst_80 : f32 to vector<8x288xf32>
    %171 = arith.mulf %170, %146 : vector<8x288xf32>
    %172 = arith.addf %169, %171 : vector<8x288xf32>
    %c7 = arith.constant 7 : index
    %c0_81 = arith.constant 0 : index
    %c0_82 = arith.constant 0 : index
    %173 = vector.load %arg2[%c7, %c0_81, %c0_82] : memref<9x8x1xf32, #tpu.memory_space<vmem>>, vector<1x8x1xf32>
    %174 = vector.shape_cast %173 : vector<1x8x1xf32> to vector<8x1xf32>
    %175 = vector.broadcast %174 : vector<8x1xf32> to vector<8x288xf32>
    %176 = arith.mulf %172, %175 : vector<8x288xf32>
    %c7_83 = arith.constant 7 : index
    %c0_84 = arith.constant 0 : index
    %c0_85 = arith.constant 0 : index
    %177 = vector.load %arg3[%c7_83, %c0_84, %c0_85] : memref<9x8x1xf32, #tpu.memory_space<vmem>>, vector<1x8x1xf32>
    %178 = vector.shape_cast %177 : vector<1x8x1xf32> to vector<8x1xf32>
    %179 = vector.broadcast %178 : vector<8x1xf32> to vector<8x288xf32>
    %180 = arith.addf %176, %179 : vector<8x288xf32>
    %cst_86 = arith.constant 0.000000e+00 : f32
    %181 = vector.broadcast %cst_86 : f32 to vector<8x288xf32>
    %182 = arith.maximumf %180, %181 : vector<8x288xf32>
    %cst_87 = arith.constant 0.353553385 : f32
    %183 = vector.broadcast %cst_87 : f32 to vector<8x288xf32>
    %184 = arith.mulf %183, %144 : vector<8x288xf32>
    %cst_88 = arith.constant -0.353553385 : f32
    %185 = vector.broadcast %cst_88 : f32 to vector<8x288xf32>
    %186 = arith.mulf %185, %145 : vector<8x288xf32>
    %187 = arith.addf %184, %186 : vector<8x288xf32>
    %cst_89 = arith.constant -0.353553385 : f32
    %188 = vector.broadcast %cst_89 : f32 to vector<8x288xf32>
    %189 = arith.mulf %188, %146 : vector<8x288xf32>
    %190 = arith.addf %187, %189 : vector<8x288xf32>
    %c8 = arith.constant 8 : index
    %c0_90 = arith.constant 0 : index
    %c0_91 = arith.constant 0 : index
    %191 = vector.load %arg2[%c8, %c0_90, %c0_91] : memref<9x8x1xf32, #tpu.memory_space<vmem>>, vector<1x8x1xf32>
    %192 = vector.shape_cast %191 : vector<1x8x1xf32> to vector<8x1xf32>
    %193 = vector.broadcast %192 : vector<8x1xf32> to vector<8x288xf32>
    %194 = arith.mulf %190, %193 : vector<8x288xf32>
    %c8_92 = arith.constant 8 : index
    %c0_93 = arith.constant 0 : index
    %c0_94 = arith.constant 0 : index
    %195 = vector.load %arg3[%c8_92, %c0_93, %c0_94] : memref<9x8x1xf32, #tpu.memory_space<vmem>>, vector<1x8x1xf32>
    %196 = vector.shape_cast %195 : vector<1x8x1xf32> to vector<8x1xf32>
    %197 = vector.broadcast %196 : vector<8x1xf32> to vector<8x288xf32>
    %198 = arith.addf %194, %197 : vector<8x288xf32>
    %cst_95 = arith.constant 0.000000e+00 : f32
    %199 = vector.broadcast %cst_95 : f32 to vector<8x288xf32>
    %200 = arith.maximumf %198, %199 : vector<8x288xf32>
    %201 = tpu.concatenate %50, %68, %86, %107, %125, %143, %164, %182, %200 in 0 : vector<8x288xf32>, vector<8x288xf32>, vector<8x288xf32>, vector<8x288xf32>, vector<8x288xf32>, vector<8x288xf32>, vector<8x288xf32>, vector<8x288xf32>, vector<8x288xf32> -> vector<72x288xf32>
    %c0_96 = arith.constant 0 : index
    %c0_97 = arith.constant 0 : index
    %202 = vector.load %arg4[%c0_96, %c0_97] : memref<8x72xf32, #tpu.memory_space<vmem>>, vector<8x72xf32>
    %cst_98 = arith.constant dense<0.000000e+00> : vector<8x288xf32>
    %203 = tpu.matmul %202, %201, %cst_98 {dimension_numbers = #tpu.dot_dimension_numbers<[1], [0], [0], [1], [0, 0, 1, 1], [], []>} : vector<8x72xf32>, vector<72x288xf32>, vector<8x288xf32> -> vector<8x288xf32>
    %c0_99 = arith.constant 0 : index
    %c0_100 = arith.constant 0 : index
    %c19 = arith.constant 19 : index
    %204 = vector.load %arg1[%c0_99, %c0_100, %c19] : memref<1x8x342xf32, #tpu.memory_space<vmem>>, vector<1x8x288xf32>
    %205 = vector.shape_cast %204 : vector<1x8x288xf32> to vector<8x288xf32>
    %206 = arith.addf %203, %205 : vector<8x288xf32>
    %cst_101 = arith.constant 0.000000e+00 : f32
    %207 = vector.broadcast %cst_101 : f32 to vector<8x288xf32>
    %208 = arith.maximumf %206, %207 : vector<8x288xf32>
    %c0_102 = arith.constant 0 : index
    %c0_103 = arith.constant 0 : index
    %c0_104 = arith.constant 0 : index
    %209 = vector.load %arg5[%c0_102, %c0_103, %c0_104] : memref<1x8x288xf32, #tpu.memory_space<vmem>>, vector<1x8x288xf32>
    %210 = vector.shape_cast %209 : vector<1x8x288xf32> to vector<8x288xf32>
    %211 = vector.shape_cast %208 : vector<8x288xf32> to vector<1x8x288xf32>
    tpu.vector_store %arg5[%c0_102, %c0_103, %c0_104], %211 {strides = array<i32>} : memref<1x8x288xf32, #tpu.memory_space<vmem>>, vector<1x8x288xf32>,
    return
  }
  func.func @transform_0(%arg0: i32) -> (i32, i32, i32) {
    %c0_i32 = arith.constant 0 : i32
    %c0_i32_0 = arith.constant 0 : i32
    %c0_i32_1 = arith.constant 0 : i32
    return %arg0, %c0_i32, %c0_i32_0 : i32, i32, i32
  }
  func.func @transform_1(%arg0: i32) -> (i32, i32, i32) {
    %c0_i32 = arith.constant 0 : i32
    %c0_i32_0 = arith.constant 0 : i32
    %c0_i32_1 = arith.constant 0 : i32
    %c0_i32_2 = arith.constant 0 : i32
    return %c0_i32, %c0_i32_0, %c0_i32_1 : i32, i32, i32
  }
  func.func @transform_2(%arg0: i32) -> (i32, i32, i32) {
    %c0_i32 = arith.constant 0 : i32
    %c0_i32_0 = arith.constant 0 : i32
    %c0_i32_1 = arith.constant 0 : i32
    %c0_i32_2 = arith.constant 0 : i32
    return %c0_i32, %c0_i32_0, %c0_i32_1 : i32, i32, i32
  }
  func.func @transform_3(%arg0: i32) -> (i32, i32) {
    %c0_i32 = arith.constant 0 : i32
    %c0_i32_0 = arith.constant 0 : i32
    %c0_i32_1 = arith.constant 0 : i32
    return %c0_i32, %c0_i32_0 : i32, i32
  }
  func.func @transform_4(%arg0: i32) -> (i32, i32, i32) {
    %c0_i32 = arith.constant 0 : i32
    %c0_i32_0 = arith.constant 0 : i32
    %c0_i32_1 = arith.constant 0 : i32
    return %arg0, %c0_i32, %c0_i32_0 : i32, i32, i32
  }
}

</mosaic_0001>

<bundles_post_ra>
// kernel: tpu_custom_call.1
= control target key start
LH: loop header
LB: loop body
LE: loop exit
PB: predicated region body
PF: predicated region fallthrough
CT: control target
= control target key end

     0   :  { %9 = vsyncpa [#allocation3], 0  ;;  %s1889_s0 = inlined_call_operand.vmem [shape: f32[2,8,342], index: 0, kind: input, shape index: {}]   ;;  %s1890_s1 = inlined_call_operand.vmem [shape: f32[9,8,1], index: 1, kind: input, shape index: {}]   ;;  %s1891_s2 = inlined_call_operand.vmem [shape: f32[9,8,1], index: 2, kind: input, shape index: {}]   ;;  %s1892_s3 = inlined_call_operand.vmem [shape: f32[8,72], index: 3, kind: input, shape index: {}]   ;;  %s1893_s4 = inlined_call_operand.hbm [shape: f32[2,8,288], index: 4, kind: output, shape index: {}]  }
   0x1   :  { %11 = vsyncpa [#allocation3 + $0x1], 0  ;;  %s1331_s15 = smov 0   ;;  %s1333_s16 = smov 0  }
   0x2   :  { %s1335_s17 = smov 0   ;;  %s1337_s18 = smov 0  }
   0x3 LB: > { %s1352_s19 = sadd.s32 4294967295, %s1294_s18   ;;  %s1094_s20 = sadd.s32 4294967294, %s1294_s18   ;;  %s1294_s18 = sphi %s1337_s18, %s1899_s18   ;;  %s1290_s17 = sphi %s1335_s17, %s1898_s17   ;;  %s1286_s16 = sphi %s1333_s16, %s1897_s16   ;;  %s1282_s15 = sphi %s1331_s15, %s1896_s15  }
   0x4   : > { %s1356_s21 = sadd.s32 1, %s1294_s18   ;;  %s113_s22 = sadd.s32 1, %s1290_s17 }
   0x5   : > { %s110_s23 = ssub.s32 %s1294_s18, %s1356_s21  ;;  %p123_p0 = scmp.ne.s32.totalorder %s1290_s17, %s1286_s16 }
   0x6   : > { %p111_p1 = scmp.eq.s32.totalorder %s110_s23, 0  ;;  %p124_p2 = scmp.eq.s32.totalorder %s1352_s19, 1 }
   0x7   : > { %p129_p3 = scmp.ne.s32.totalorder %s1286_s16, %s1282_s15  ;;  %p130_p4 = scmp.eq.s32.totalorder %s1094_s20, 1 }
   0x8   : > { %s1367_s24 = scalar_select %p111_p1, %s1290_s17, %s113_s22  }
   0x9   : > { %p1369_p5 = por %p124_p2, %p123_p0  ;;  %p1373_p6 = por %p130_p4, %p129_p3 }
   0xa   : > { %p1097_p7 = scmp.ge.s32.totalorder %s1294_s18, 1  ;;  %p165_p8 = scmp.lt.s32.totalorder %s1294_s18, 3 }
   0xc   : > { %p166_p9 = pnand %p1097_p7, %p165_p8 }
   0xd   : > { %p191_p10 = scmp.lt.s32.totalorder (!%p166_p9), %s1352_s19, 1  ;;  %v1296_v0 = vmov (!%p166_p9), 0   ;;  %s1297_s6 = smov (!%p166_p9), 110   ;;  %v1099_v16 = vld [vmem:[%s1890_s1 + $0x8] sm:$0xff] (!%p166_p9)  ;;  %v348_v17 = vld [vmem:[%s1890_s1] sm:$0xff] (!%p166_p9)  ;;  %v1101_v20 = vld [vmem:[%s1890_s1 + $0x10] sm:$0xff] (!%p166_p9) }
   0xe   : > { %169 = sbr.rel (%p166_p9) target bundleno = 646 (0x286), region = 36  ;;  %1231 = vset.pattern.permute.xlu1 (!%p166_p9), %v1296_v0  ;;  %1230 = vset.pattern.permute.xlu0 (!%p166_p9), %v1296_v0  ;;  %s1298_s7 = smov (!%p166_p9), 92   ;;  %v357_v18 = vld [vmem:[%s1891_s2] sm:$0xff] (!%p166_p9)  ;;  %v1100_v19 = vld [vmem:[%s1891_s2 + $0x8] sm:$0xff] (!%p166_p9)  ;;  %v1103_v21 = vld [vmem:[%s1890_s1 + $0x18] sm:$0xff] (!%p166_p9)  ;;  %vm211_vm0 = vcmask (!%p166_p9), 900096  }
   0xf   : > { %v1102_v22 = vld [vmem:[%s1891_s2 + $0x10] sm:$0xff] (!%p166_p9)  ;;  %v1104_v23 = vld [vmem:[%s1891_s2 + $0x18] sm:$0xff] (!%p166_p9)  ;;  %v1105_v24 = vld [vmem:[%s1890_s1 + $0x20] sm:$0xff] (!%p166_p9)  ;;  %s1300_s29 = smov (!%p166_p9), 126   ;;  %vm226_vm1 = vcmask (!%p166_p9), 752640   ;;  %v1301_v50 = vmov (!%p166_p9), 0.0|0.0  }
  0x10   : > { %v1107_v25 = vld [vmem:[%s1890_s1 + $0x28] sm:$0xff] (!%p166_p9)  ;;  %v1106_v26 = vld [vmem:[%s1891_s2 + $0x20] sm:$0xff] (!%p166_p9)  ;;  %v1109_v28 = vld [vmem:[%s1890_s1 + $0x30] sm:$0xff] (!%p166_p9)  ;;  %1167 = vmatprep.subr.bf16.mxu1 (!%p166_p9), %v1301_v50  ;;  %vm1303_vm2 = vmmov (!%p166_p9), 0   ;;  %s1304_s12 = smov (!%p166_p9), 109   ;;  %vm324_vm3 = vcmask (!%p166_p9), 1039360  }
  0x11   : > { %v1108_v27 = vld [vmem:[%s1891_s2 + $0x28] sm:$0xff] (!%p166_p9)  ;;  %v1111_v29 = vld [vmem:[%s1890_s1 + $0x38] sm:$0xff] (!%p166_p9)  ;;  %vm339_vm4 = vcmask (!%p166_p9), 1031168   ;;  %vm868_vm5 = vcmask (!%p166_p9), 588800   ;;  %s188_s20 = sand.u32 (!%p166_p9), 1, %s1286_s16   ;;  %vm862_vm6 = vcmask (!%p166_p9), 891904  }
  0x12   : > { %s1179_s22 = smul.u32 (!%p166_p9), 24, %s188_s20  ;;  %vm1018_vm7 = vcmask (!%p166_p9), 261120  }
  0x13   : > { %s1181_s23 = smul.u32 (!%p166_p9), 384, %s1352_s19 }
  0x15   : > { %s192_s27 = scalar_select %p191_p10, %s1352_s19, 1 }
  0x16   : > { %s1021_s19 = scalar_lea.sflag [#allocation3], %s188_s20 }
  0x17   : > { %s1180_s28 = smul.u32 24, %s192_s27  ;;  %s190_s27 = scalar_lea.vmem [#allocation2], %s1179_s22 }
  0x19   : > { %s195_s5 = scalar_lea.vmem %s1889_s0, %s1180_s28  ;;  %s1299_s28 = smov 127  }
  0x1a   : > { %v1384_v1 = vld [vmem:[%s195_s5 + $0x8] sm:$0xff]  ;;  %v1386_v2 = vld [vmem:[%s195_s5] sm:$0xff]  ;;  %v1388_v3 = vld [vmem:[%s195_s5 + $0x10] sm:$0xff]  ;;  %s1847_s5 = scalar_lea.hbm %s1893_s4, %s1181_s23 }
  0x1b   : > { %v1391_v4 = vmul.f32 0.35355338, %v1384_v1  ;;  %v1394_v5 = vmul.f32 0.35355338, %v1386_v2  ;;  %v1399_v6 = vmul.f32 0.35355338, %v1388_v3 }
  0x1c   : > { %v239_v7 = vmul.f32 0.3487944, %v1384_v1  ;;  %v240_v8 = vmul.f32 0.3487944, %v1388_v3  ;;  %v238_v9 = vmul.f32 0.3487944, %v1386_v2 }
  0x1d   : > { %207 = vrot.lane.b32.xlu0 %v1391_v4, %s1297_s6  ;;  %205 = vrot.lane.b32.xlu1 %v1394_v5, %s1297_s6  ;;  %v259_v10 = vmul.f32 0.2647776, %v1384_v1  ;;  %v260_v11 = vmul.f32 0.2647776, %v1388_v3  ;;  %v258_v12 = vmul.f32 0.2647776, %v1386_v2 }
  0x1e   : > { %v280_v13 = vmul.f32 -0.35355338, %v1388_v3  ;;  %v279_v14 = vmul.f32 -0.35355338, %v1384_v1  ;;  %v278_v15 = vmul.f32 -0.35355338, %v1386_v2 }
  0x1f   : > { %v237_v42 = vmul.f32 0.516828, %v1388_v3 }
  0x21   : > { %209 = vrot.lane.b32.xlu0 %v1399_v6, %s1297_s6  ;;  %222 = vrot.lane.b32.xlu1 %v1391_v4, %s1298_s7 }
  0x25   : > { %224 = vrot.lane.b32.xlu0 %v1399_v6, %s1298_s7  ;;  %220 = vrot.lane.b32.xlu1 %v1394_v5, %s1298_s7 }
  0x29   : > { %246 = vrot.lane.b32.xlu0 %v239_v7, %s1297_s6  ;;  %248 = vrot.lane.b32.xlu1 %v240_v8, %s1297_s6 }
  0x2d   : > { %244 = vrot.lane.b32.xlu0 %v238_v9, %s1297_s6  ;;  %266 = vrot.lane.b32.xlu1 %v259_v10, %s1298_s7 }
  0x31   : > { %268 = vrot.lane.b32.xlu0 %v260_v11, %s1298_s7  ;;  %264 = vrot.lane.b32.xlu1 %v258_v12, %s1298_s7 }
  0x35   : > { %288 = vrot.lane.b32.xlu1 %v280_v13, %s1297_s6  ;;  %286 = vrot.lane.b32.xlu0 %v279_v14, %s1297_s6 }
  0x39   : > { %300 = vrot.lane.b32.xlu1 %v279_v14, %s1298_s7  ;;  %284 = vrot.lane.b32.xlu0 %v278_v15, %s1297_s6 }
  0x3d   : > { %298 = vrot.lane.b32.xlu1 %v278_v15, %s1298_s7  ;;  %302 = vrot.lane.b32.xlu0 %v280_v13, %s1298_s7  ;;  %s1305_s7 = smov [#allocation2]  }
  0x3e   : > { %s1236_s8 = sshll.u32 %s1305_s7, 4  ;;  %s1237_s8 = int_to_ptr.vmem [resolvable:$false] %s1236_s8 }
  0x3f   : > { %s1238_s9 = scalar_lea.vmem %s1237_s8, 768 }
  0x41   : > { %416 = vperm.xlu1 %1231, %v1099_v16   ;;  %351 = vperm.xlu0 %1230, %v348_v17  }
  0x45   : > { %360 = vperm.xlu1 %1231, %v357_v18   ;;  %426 = vperm.xlu0 %1230, %v1100_v19   ;;  %v236_v18 = vmul.f32 0.516828, %v1384_v1 }
  0x49   : > { %473 = vperm.xlu1 %1231, %v1101_v20   ;;  %530 = vperm.xlu0 %1230, %v1103_v21  }
  0x4d   : > { %483 = vperm.xlu1 %1231, %v1102_v22   ;;  %540 = vperm.xlu0 %1230, %v1104_v23  }
  0x51   : > { %596 = vperm.xlu1 %1231, %v1105_v24   ;;  %653 = vperm.xlu0 %1230, %v1107_v25   ;;  %v235_v24 = vmul.f32 0.516828, %v1386_v2 }
  0x55   : > { %606 = vperm.xlu1 %1231, %v1106_v26   ;;  %663 = vperm.xlu0 %1230, %v1108_v27  }
  0x59   : > { %710 = vperm.xlu1 %1231, %v1109_v28   ;;  %776 = vperm.xlu0 %1230, %v1111_v29  }
  0x8f   : > { %v208_v30 = vpop.permute.xlu0 %207  ;;  %v206_v31 = vpop.permute.xlu1 %205 }
  0x90   : > { %v212_v58 = vsel %vm211_vm0, %v206_v31, %v208_v30 }
  0x91   : > { %v217_v0 = vadd.f32 %v212_v58, %v1394_v5 }
  0x93   : > { %v210_v32 = vpop.permute.xlu0 %209  ;;  %v223_v33 = vpop.permute.xlu1 %222 }
  0x94   : > { %v219_v34 = vadd.f32 %v210_v32, %v1399_v6  ;;  %v213_v51 = vsel %vm211_vm0, %v208_v30, %v210_v32 }
  0x95   : > { %v218_v57 = vadd.f32 %v213_v51, %v1391_v4 }
  0x97   : > { %v225_v35 = vpop.permute.xlu0 %224  ;;  %v221_v36 = vpop.permute.xlu1 %220 }
  0x98   : > { %v1457_v37 = vadd.f32 %v225_v35, %v219_v34  ;;  %v228_v54 = vsel %vm226_vm1, %v223_v33, %v225_v35  ;;  %v227_v61 = vsel %vm226_vm1, %v221_v36, %v223_v33 }
  0x99   : > { %v1495_v59 = vadd.f32 %v228_v54, %v218_v57  ;;  %v1507_v9 = vadd.f32 %v227_v61, %v217_v0  ;;  %v1110_v57 = vld [vmem:[%s1891_s2 + $0x30] sm:$0xff] }
  0x9a   : > { %v1460_v38 = vmul.f32 0.35355338, %v1457_v37  ;;  %v374_v39 = vmul.f32 0.3487944, %v1457_v37  ;;  %v394_v46 = vmul.f32 0.2647776, %v1457_v37 }
  0x9b   : > { %v1463_v40 = vpop.permute.xlu0 %246  ;;  %v249_v41 = vpop.permute.xlu1 %248  ;;  %v437_v52 = vmul.f32 -0.35355338, %v1457_v37  ;;  %v1510_v10 = vmul.f32 0.35355338, %v1495_v59  ;;  %v393_v16 = vmul.f32 0.2647776, %v1495_v59 }
  0x9c   : > { %322 = vrot.lane.b32.xlu0 %v1460_v38, %s1299_s28  ;;  %382 = vrot.lane.b32.xlu1 %v374_v39, %s1299_s28  ;;  %v257_v45 = vadd.f32 %v249_v41, %v237_v42  ;;  %v373_v17 = vmul.f32 0.3487944, %v1495_v59  ;;  %v251_v19 = vsel %vm211_vm0, %v1463_v40, %v249_v41  ;;  %v372_v20 = vmul.f32 0.3487944, %v1507_v9 }
  0x9d   : > { %v436_v21 = vmul.f32 -0.35355338, %v1495_v59  ;;  %v256_v23 = vadd.f32 %v251_v19, %v236_v18  ;;  %v392_v27 = vmul.f32 0.2647776, %v1507_v9  ;;  %v435_v28 = vmul.f32 -0.35355338, %v1507_v9 }
  0x9f   : > { %v1469_v43 = vpop.permute.xlu0 %244  ;;  %v1471_v44 = vpop.permute.xlu1 %266 }
  0xa0   : > { %337 = vrot.lane.b32.xlu0 %v1460_v38, %s1300_s29  ;;  %v250_v25 = vsel %vm211_vm0, %v1469_v43, %v1463_v40 }
  0xa1   : > { %v255_v30 = vadd.f32 %v250_v25, %v235_v24 }
  0xa3   : > { %v269_v47 = vpop.permute.xlu0 %268  ;;  %v265_v48 = vpop.permute.xlu1 %264 }
  0xa4   : > { %v1476_v49 = vadd.f32 %v269_v47, %v257_v45  ;;  %402 = vrot.lane.b32.xlu0 %v394_v46, %s1300_s29  ;;  %v271_v22 = vsel %vm226_vm1, %v1471_v44, %v269_v47  ;;  %v270_v29 = vsel %vm226_vm1, %v265_v48, %v1471_v44 }
  0xa5   : > { %v1551_v26 = vadd.f32 %v271_v22, %v256_v23  ;;  %v1559_v31 = vadd.f32 %v270_v29, %v255_v30 }
  0xa6   : > { %v1483_v53 = vmul.f32 0.35355338, %v1476_v49  ;;  %v617_v60 = vmul.f32 -0.35355338, %v1476_v49  ;;  %v554_v14 = vmul.f32 0.3487944, %v1476_v49 }
  0xa7   : > { %v1486_v55 = vpop.permute.xlu0 %286  ;;  %v1488_v56 = vpop.permute.xlu1 %288  ;;  %v574_v15 = vmul.f32 0.2647776, %v1476_v49  ;;  %v1562_v32 = vmul.f32 0.35355338, %v1551_v26  ;;  %v1568_v33 = vmul.f32 0.35355338, %v1559_v31 }
  0xa8   : > { %445 = vrot.lane.b32.xlu0 %v437_v52, %s1299_s28  ;;  %502 = vrot.lane.b32.xlu1 %v1483_v53, %s1299_s28  ;;  %v553_v34 = vmul.f32 0.3487944, %v1551_v26  ;;  %v616_v35 = vmul.f32 -0.35355338, %v1551_v26  ;;  %v297_v36 = vadd.f32 %v1488_v56, %v1399_v6  ;;  %v552_v40 = vmul.f32 0.3487944, %v1559_v31 }
  0xa9   : > { %v615_v41 = vmul.f32 -0.35355338, %v1559_v31  ;;  %v291_v42 = vsel %vm211_vm0, %v1486_v55, %v1488_v56  ;;  %v573_v45 = vmul.f32 0.2647776, %v1551_v26 }
  0xaa   : > { %v296_v44 = vadd.f32 %v291_v42, %v1391_v4  ;;  %v572_v4 = vmul.f32 0.2647776, %v1559_v31  ;;  %v1302_v42 = vmov 0.0  }
  0xab   : > { %v285_v62 = vpop.permute.xlu0 %284  ;;  %v1499_v63 = vpop.permute.xlu1 %300  ;;  %936 = vmatprep.mubr.f32.mxu0 %v1302_v42  ;;  %1148 = vmatprep.mubr.msk.f32.mxu1 %vm1303_vm2, %v1302_v42 }
  0xac   : > { %459 = vrot.lane.b32.xlu0 %v437_v52, %s1300_s29  ;;  %625 = vrot.lane.b32.xlu1 %v617_v60, %s1299_s28  ;;  %v290_v7 = vsel %vm211_vm0, %v285_v62, %v1486_v55  ;;  %v1112_v52 = vld [vmem:[%s1891_s2 + $0x38] sm:$0xff] }
  0xad   : > { %v295_v8 = vadd.f32 %v290_v7, %v1394_v5  ;;  %v1522_v5 = vmul.f32 0.35355338, %v1507_v9 }
  0xaf   : > { %v299_v11 = vpop.permute.xlu1 %298  ;;  %v303_v39 = vpop.permute.xlu0 %302 }
  0xb0   : > { %516 = vrot.lane.b32.xlu0 %v1483_v53, %s1300_s29  ;;  %320 = vrot.lane.b32.xlu1 %v1510_v10, %s1299_s28  ;;  %v304_v12 = vsel %vm226_vm1, %v299_v11, %v1499_v63  ;;  %v1590_v43 = vadd.f32 %v303_v39, %v297_v36  ;;  %v305_v6 = vsel %vm226_vm1, %v1499_v63, %v303_v39 }
  0xb1   : > { %v1518_v13 = vadd.f32 %v304_v12, %v295_v8  ;;  %v1601_v47 = vadd.f32 %v305_v6, %v296_v44 }
  0xb2   : > { %v1599_v46 = vmul.f32 0.35355338, %v1590_v43  ;;  %v734_v61 = vmul.f32 0.3487944, %v1590_v43  ;;  %v754_v0 = vmul.f32 0.2647776, %v1590_v43 }
  0xb3   : > { %v733_v48 = vmul.f32 0.3487944, %v1601_v47  ;;  %v1616_v54 = vmul.f32 0.35355338, %v1601_v47  ;;  %v732_v58 = vmul.f32 0.3487944, %v1518_v13 }
  0xb4   : > { %562 = vrot.lane.b32.xlu0 %v554_v14, %s1299_s28  ;;  %318 = vrot.lane.b32.xlu1 %v1522_v5, %s1299_s28  ;;  %v1641_v7 = vmul.f32 0.35355338, %v1518_v13  ;;  %v752_v11 = vmul.f32 0.2647776, %v1518_v13  ;;  %v795_v23 = vmul.f32 -0.35355338, %v1518_v13 }
  0xb5   : > { %v797_v24 = vmul.f32 -0.35355338, %v1590_v43 }
  0xb8   : > { %582 = vrot.lane.b32.xlu0 %v574_v15, %s1300_s29  ;;  %335 = vrot.lane.b32.xlu1 %v1510_v10, %s1300_s29  ;;  %v796_v15 = vmul.f32 -0.35355338, %v1601_v47 }
  0xbc   : > { %639 = vrot.lane.b32.xlu0 %v617_v60, %s1300_s29  ;;  %400 = vrot.lane.b32.xlu1 %v393_v16, %s1300_s29  ;;  %v753_v16 = vmul.f32 0.2647776, %v1601_v47 }
  0xc0   : > { %380 = vrot.lane.b32.xlu0 %v373_v17, %s1299_s28  ;;  %333 = vrot.lane.b32.xlu1 %v1522_v5, %s1300_s29  ;;  %v1608_v51 = vpop.permute.xlu0 %351  ;;  %v1618_v55 = vpop.permute.xlu1 %416  ;;  %v1114_v17 = vld [vmem:[%s1891_s2 + $0x40] sm:$0xff] }
  0xc4   : > { %378 = vrot.lane.b32.xlu0 %v372_v20, %s1299_s28  ;;  %443 = vrot.lane.b32.xlu1 %v436_v21, %s1299_s28  ;;  %v1622_v56 = vpop.permute.xlu0 %426  ;;  %v1629_v60 = vpop.permute.xlu1 %360  ;;  %v1113_v20 = vld [vmem:[%s1890_s1 + $0x40] sm:$0xff] }
  0xc8   : > { %398 = vrot.lane.b32.xlu0 %v392_v27, %s1300_s29  ;;  %441 = vrot.lane.b32.xlu1 %v435_v28, %s1299_s28  ;;  %v1632_v62 = vpop.permute.xlu0 %530  ;;  %v1637_v63 = vpop.permute.xlu1 %473 }
  0xcc   : > { %457 = vrot.lane.b32.xlu1 %v436_v21, %s1300_s29  ;;  %500 = vrot.lane.b32.xlu0 %v1562_v32, %s1299_s28  ;;  %v1646_v8 = vpop.permute.xlu0 %540  ;;  %v1649_v12 = vpop.permute.xlu1 %483 }
  0xd0   : > { %514 = vrot.lane.b32.xlu1 %v1562_v32, %s1300_s29  ;;  %498 = vrot.lane.b32.xlu0 %v1568_v33, %s1299_s28  ;;  %v1654_v14 = vpop.permute.xlu0 %653  ;;  %v1663_v18 = vpop.permute.xlu1 %596 }
  0xd4   : > { %455 = vrot.lane.b32.xlu1 %v435_v28, %s1300_s29  ;;  %512 = vrot.lane.b32.xlu0 %v1568_v33, %s1300_s29  ;;  %v1665_v19 = vpop.permute.xlu0 %663  ;;  %v1672_v21 = vpop.permute.xlu1 %606 }
  0xd8   : > { %560 = vrot.lane.b32.xlu1 %v553_v34, %s1299_s28  ;;  %623 = vrot.lane.b32.xlu0 %v616_v35, %s1299_s28  ;;  %v1675_v22 = vpop.permute.xlu0 %776  ;;  %v1681_v25 = vpop.permute.xlu1 %710  ;;  %v371_v34 = vmul.f32 0.516828, %v1457_v37 }
  0xdc   : > { %558 = vrot.lane.b32.xlu1 %v552_v40, %s1299_s28  ;;  %621 = vrot.lane.b32.xlu0 %v615_v41, %s1299_s28 }
  0xe0   : > { %580 = vrot.lane.b32.xlu1 %v573_v45, %s1300_s29  ;;  %635 = vrot.lane.b32.xlu0 %v615_v41, %s1300_s29 }
  0xe4   : > { %637 = vrot.lane.b32.xlu1 %v616_v35, %s1300_s29  ;;  %682 = vrot.lane.b32.xlu0 %v1599_v46, %s1299_s28 }
  0xe8   : > { %578 = vrot.lane.b32.xlu1 %v572_v4, %s1300_s29  ;;  %740 = vrot.lane.b32.xlu0 %v733_v48, %s1299_s28 }
  0xec   : > { %786 = vperm.xlu0 %1230, %v1112_v52   ;;  %680 = vrot.lane.b32.xlu1 %v1616_v54, %s1299_s28 }
  0xf0   : > { %720 = vperm.xlu1 %1231, %v1110_v57   ;;  %738 = vrot.lane.b32.xlu0 %v732_v58, %s1299_s28 }
  0xf4   : > { %742 = vrot.lane.b32.xlu1 %v734_v61, %s1299_s28  ;;  %696 = vrot.lane.b32.xlu0 %v1599_v46, %s1300_s29 }
  0xf8   : > { %762 = vrot.lane.b32.xlu0 %v754_v0, %s1300_s29  ;;  %678 = vrot.lane.b32.xlu1 %v1641_v7, %s1299_s28 }
  0xfc   : > { %758 = vrot.lane.b32.xlu0 %v752_v11, %s1300_s29  ;;  %694 = vrot.lane.b32.xlu1 %v1616_v54, %s1300_s29 }
 0x100   : > { %803 = vrot.lane.b32.xlu0 %v796_v15, %s1299_s28  ;;  %760 = vrot.lane.b32.xlu1 %v753_v16, %s1300_s29 }
 0x104   : > { %843 = vperm.xlu0 %1230, %v1114_v17   ;;  %692 = vrot.lane.b32.xlu1 %v1641_v7, %s1300_s29 }
 0x108   : > { %817 = vrot.lane.b32.xlu0 %v796_v15, %s1300_s29  ;;  %833 = vperm.xlu1 %1231, %v1113_v20  }
 0x10c   : > { %815 = vrot.lane.b32.xlu0 %v795_v23, %s1300_s29  ;;  %805 = vrot.lane.b32.xlu1 %v797_v24, %s1299_s28 }
 0x10e   : > { %v323_v27 = vpop.permute.xlu0 %322  ;;  %v1685_v29 = vpop.permute.xlu1 %382 }
 0x10f   : > { %v332_v28 = vadd.f32 %v323_v27, %v1460_v38  ;;  %v391_v36 = vadd.f32 %v1685_v29, %v371_v34  ;;  %v551_v34 = vmul.f32 0.516828, %v1476_v49 }
 0x110   : > { %801 = vrot.lane.b32.xlu1 %v795_v23, %s1299_s28  ;;  %858 = vrot.lane.b32.xlu0 %v1384_v1, %s1304_s12  ;;  %s1035_s28 = sshll.u32 %s190_s27, 4  ;;  %s1849_s28 = int_to_ptr.vmem [resolvable:$true] %s1035_s28 }
 0x111   : > { %s1232_s6 = scalar_lea.vmem %s1849_s28, 384  ;;  %p1239_p0 = scmp.lt.s32.totalorder %s1849_s28, %s1237_s8 }
 0x112   : > { %v338_v30 = vpop.permute.xlu0 %337  ;;  %p1233_p11 = scmp.ne.s32.totalorder %s1849_s28, %s1232_s6  ;;  %p1240_p1 = scmp.lt.s32.totalorder %s1238_s9, %s1232_s6 }
 0x113   : > { %v347_v35 = vadd.f32 %v338_v30, %v332_v28 }
 0x114   : > { %819 = vrot.lane.b32.xlu1 %v797_v24, %s1300_s29  ;;  %p1234_p12 = pnand %p1233_p11, %p1369_p5  ;;  %p1241_p2 = por %p1240_p1, %p1239_p0 }
 0x115   : > { %v356_v39 = vmul.f32 %v1608_v51, %v347_v35 }
 0x116   : > { %v1691_v40 = vpop.permute.xlu0 %402  ;;  %p1235_p13 = pneg %p1234_p12 }
 0x117   : > { %v411_v41 = vadd.f32 %v1691_v40, %v391_v36  ;;  %v365_v45 = vadd.f32 %v1629_v60, %v356_v39 }
 0x118   : > { %856 = vrot.lane.b32.xlu1 %v1386_v2, %s1304_s12  ;;  %p1242_p3 = pnand %p1241_p2, %p1235_p13 }
 0x119   : > { %v421_v44 = vmul.f32 %v1618_v55, %v411_v41  ;;  %v368_v52 = vmax.f32 %v365_v45, 0.0 }
 0x11a   : > { %v1697_v6 = vpop.permute.xlu0 %445  ;;  %v1699_v37 = vpop.permute.xlu1 %502 }
 0x11b   : > { %v431_v4 = vadd.f32 %v1622_v56, %v421_v44  ;;  %v454_v48 = vadd.f32 %v1697_v6, %v1460_v38  ;;  %v511_v38 = vadd.f32 %v1699_v37, %v1483_v53 }
 0x11c   : > { %860 = vrot.lane.b32.xlu1 %v1388_v3, %s1304_s12 }
 0x11d   : > { %v434_v57 = vmax.f32 %v431_v4, 0.0 }
 0x11e   : > { %v1704_v58 = vpop.permute.xlu0 %459  ;;  %v1706_v61 = vpop.permute.xlu1 %625 }
 0x11f   : > { %v468_v0 = vadd.f32 %v1704_v58, %v454_v48  ;;  %v1168_v11 = vpack.c.bf16 %v434_v57, %v368_v52  ;;  %v634_v48 = vadd.f32 %v1706_v61, %v1483_v53 }
 0x121   : > { %v478_v15 = vmul.f32 %v1637_v63, %v468_v0  ;;  %1169 = vmatpush3.bf16.msra.mxu1 %v1168_v11 }
 0x122   : > { %v1715_v16 = vpop.permute.xlu0 %516  ;;  %v321_v17 = vpop.permute.xlu1 %320  ;;  %1170 = vmatprep.subr.bf16.mxu1 %v1301_v50 }
 0x123   : > { %v525_v20 = vadd.f32 %v1715_v16, %v511_v38  ;;  %v488_v23 = vadd.f32 %v1649_v12, %v478_v15  ;;  %v326_v44 = vsel %vm324_vm3, %v321_v17, %v323_v27 }
 0x124   : > { %v331_v57 = vadd.f32 %v326_v44, %v1510_v10 }
 0x125   : > { %v535_v1 = vmul.f32 %v1632_v62, %v525_v20  ;;  %v491_v36 = vmax.f32 %v488_v23, 0.0  ;;  %v370_v23 = vmul.f32 0.516828, %v1495_v59 }
 0x126   : > { %v1722_v2 = vpop.permute.xlu0 %562  ;;  %v319_v24 = vpop.permute.xlu1 %318 }
 0x127   : > { %v545_v28 = vadd.f32 %v1646_v8, %v535_v1  ;;  %v571_v35 = vadd.f32 %v1722_v2, %v551_v34  ;;  %v325_v15 = vsel %vm324_vm3, %v319_v24, %v321_v17 }
 0x129   : > { %v548_v39 = vmax.f32 %v545_v28, 0.0 }
 0x12a   : > { %v1727_v41 = vpop.permute.xlu0 %582  ;;  %v336_v3 = vpop.permute.xlu1 %335 }
 0x12b   : > { %v591_v45 = vadd.f32 %v1727_v41, %v571_v35  ;;  %v1171_v4 = vpack.c.bf16 %v548_v39, %v491_v36  ;;  %v341_v49 = vsel %vm339_vm4, %v336_v3, %v338_v30  ;;  %v330_v36 = vadd.f32 %v325_v15, %v1522_v5 }
 0x12c   : > { %v346_v38 = vadd.f32 %v341_v49, %v331_v57 }
 0x12d   : > { %v601_v52 = vmul.f32 %v1663_v18, %v591_v45  ;;  %1172 = vmatpush3.bf16.msra.mxu1 %v1171_v4 }
 0x12e   : > { %v1736_v0 = vpop.permute.xlu0 %639  ;;  %v401_v11 = vpop.permute.xlu1 %400  ;;  %1173 = vmatprep.subr.bf16.mxu1 %v1301_v50  ;;  %v355_v17 = vmul.f32 %v1608_v51, %v346_v38 }
 0x12f   : > { %v648_v27 = vadd.f32 %v1736_v0, %v634_v48  ;;  %v611_v20 = vadd.f32 %v1672_v21, %v601_v52  ;;  %v405_v24 = vsel %vm339_vm4, %v401_v11, %v1691_v40 }
 0x131   : > { %v658_v53 = vmul.f32 %v1654_v14, %v648_v27  ;;  %v614_v44 = vmax.f32 %v611_v20, 0.0 }
 0x132   : > { %v381_v30 = vpop.permute.xlu0 %380  ;;  %v334_v1 = vpop.permute.xlu1 %333 }
 0x133   : > { %v668_v28 = vadd.f32 %v1665_v19, %v658_v53  ;;  %v385_v34 = vsel %vm324_vm3, %v381_v30, %v1685_v29  ;;  %v340_v35 = vsel %vm339_vm4, %v334_v1, %v336_v3  ;;  %v369_v29 = vmul.f32 0.516828, %v1507_v9 }
 0x134   : > { %v390_v39 = vadd.f32 %v385_v34, %v370_v23  ;;  %v345_v4 = vadd.f32 %v340_v35, %v330_v36  ;;  %v364_v3 = vadd.f32 %v1629_v60, %v355_v17 }
 0x135   : > { %v671_v45 = vmax.f32 %v668_v28, 0.0 }
 0x136   : > { %v410_v59 = vadd.f32 %v405_v24, %v390_v39  ;;  %v379_v48 = vpop.permute.xlu0 %378  ;;  %v444_v52 = vpop.permute.xlu1 %443  ;;  %v354_v38 = vmul.f32 %v1608_v51, %v345_v4  ;;  %v367_v1 = vmax.f32 %v364_v3, 0.0 }
 0x137   : > { %v384_v49 = vsel %vm324_vm3, %v379_v48, %v381_v30  ;;  %v1174_v57 = vpack.c.bf16 %v671_v45, %v614_v44  ;;  %v448_v23 = vsel %vm324_vm3, %v444_v52, %v1697_v6 }
 0x138   : > { %v420_v27 = vmul.f32 %v1618_v55, %v410_v59  ;;  %v389_v15 = vadd.f32 %v384_v49, %v369_v29  ;;  %v453_v34 = vadd.f32 %v448_v23, %v1510_v10  ;;  %v363_v17 = vadd.f32 %v1629_v60, %v354_v38 }
 0x139   : > { %1175 = vmatpush3.bf16.msra.mxu1 %v1174_v57 }
 0x13a   : > { %v399_v40 = vpop.permute.xlu0 %398  ;;  %v442_v20 = vpop.permute.xlu1 %441  ;;  %v430_v53 = vadd.f32 %v1622_v56, %v420_v27  ;;  %1176 = vmatprep.subr.bf16.mxu1 %v1301_v50  ;;  %v366_v59 = vmax.f32 %v363_v17, 0.0 }
 0x13b   : > { %v404_v30 = vsel %vm339_vm4, %v399_v40, %v401_v11  ;;  %v447_v60 = vsel %vm324_vm3, %v442_v20, %v444_v52 }
 0x13c   : > { %v409_v9 = vadd.f32 %v404_v30, %v389_v15  ;;  %v433_v28 = vmax.f32 %v430_v53, 0.0  ;;  %v452_v57 = vadd.f32 %v447_v60, %v1522_v5  ;;  %v549_v60 = vmul.f32 0.516828, %v1559_v31 }
 0x13e   : > { %v419_v35 = vmul.f32 %v1618_v55, %v409_v9  ;;  %v501_v51 = vpop.permute.xlu0 %500  ;;  %v458_v36 = vpop.permute.xlu1 %457  ;;  %v1151_v39 = vpack.c.bf16 %v433_v28, %v367_v1 }
 0x13f   : > { %v505_v50 = vsel %vm324_vm3, %v501_v51, %v1699_v37  ;;  %v462_v6 = vsel %vm339_vm4, %v458_v36, %v1704_v58 }
 0x140   : > { %v467_v24 = vadd.f32 %v462_v6, %v453_v34  ;;  %1152 = vmatprep.subr.bf16.mxu0 %v1151_v39  ;;  %v429_v11 = vadd.f32 %v1622_v56, %v419_v35  ;;  %v510_v44 = vadd.f32 %v505_v50, %v1562_v32 }
 0x142   : > { %v477_v10 = vmul.f32 %v1637_v63, %v467_v24  ;;  %v499_v55 = vpop.permute.xlu0 %498  ;;  %v515_v45 = vpop.permute.xlu1 %514  ;;  %v432_v4 = vmax.f32 %v429_v11, 0.0 }
 0x143   : > { %v504_v48 = vsel %vm324_vm3, %v499_v55, %v501_v51  ;;  %v519_v37 = vsel %vm339_vm4, %v515_v45, %v1715_v16 }
 0x144   : > { %v524_v58 = vadd.f32 %v519_v37, %v510_v44  ;;  %v1153_v49 = vpack.c.bf16 %v432_v4, %v366_v59  ;;  %v509_v56 = vadd.f32 %v504_v48, %v1568_v33  ;;  %v487_v38 = vadd.f32 %v1649_v12, %v477_v10 }
 0x146   : > { %v534_v29 = vmul.f32 %v1632_v62, %v524_v58  ;;  %v513_v3 = vpop.permute.xlu0 %512  ;;  %1154 = vmatpush1.bf16.msra.mxu0 %v1153_v49  ;;  %v456_v27 = vpop.permute.xlu1 %455  ;;  %v490_v9 = vmax.f32 %v487_v38, 0.0 }
 0x147   : > { %v518_v52 = vsel %vm339_vm4, %v513_v3, %v515_v45  ;;  %v461_v15 = vsel %vm339_vm4, %v456_v27, %v458_v36 }
 0x148   : > { %v523_v40 = vadd.f32 %v518_v52, %v509_v56  ;;  %v466_v20 = vadd.f32 %v461_v15, %v452_v57  ;;  %v544_v16 = vadd.f32 %v1646_v8, %v534_v29 }
 0x14a   : > { %v533_v53 = vmul.f32 %v1632_v62, %v523_v40  ;;  %v476_v5 = vmul.f32 %v1637_v63, %v466_v20  ;;  %v624_v23 = vpop.permute.xlu0 %623  ;;  %v561_v30 = vpop.permute.xlu1 %560  ;;  %v547_v1 = vmax.f32 %v544_v16, 0.0  ;;  %v550_v62 = vmul.f32 0.516828, %v1551_v26 }
 0x14b   : > { %v565_v39 = vsel %vm324_vm3, %v561_v30, %v1722_v2  ;;  %v628_v11 = vsel %vm324_vm3, %v624_v23, %v1706_v61 }
 0x14c   : > { %v1155_v28 = vpack.c.bf16 %v547_v1, %v490_v9  ;;  %v486_v34 = vadd.f32 %v1649_v12, %v476_v5  ;;  %v543_v35 = vadd.f32 %v1646_v8, %v533_v53  ;;  %v570_v6 = vadd.f32 %v565_v39, %v550_v62 }
 0x14d   : > { %v633_v10 = vadd.f32 %v628_v11, %v1562_v32 }
 0x14e   : > { %1156 = vmatprep.subr.bf16.mxu0 %v1155_v28  ;;  %v559_v51 = vpop.permute.xlu1 %558  ;;  %v489_v36 = vmax.f32 %v486_v34, 0.0  ;;  %v546_v17 = vmax.f32 %v543_v35, 0.0  ;;  %v622_v50 = vpop.permute.xlu0 %621 }
 0x14f   : > { %v627_v12 = vsel %vm324_vm3, %v622_v50, %v624_v23  ;;  %v564_v59 = vsel %vm324_vm3, %v559_v51, %v561_v30 }
 0x150   : > { %v1157_v63 = vpack.c.bf16 %v546_v17, %v489_v36  ;;  %v632_v2 = vadd.f32 %v627_v12, %v1568_v33  ;;  %v569_v37 = vadd.f32 %v564_v59, %v549_v60 }
 0x152   : > { %v581_v24 = vpop.permute.xlu1 %580  ;;  %1158 = vmatpush1.bf16.msra.mxu0 %v1157_v63  ;;  %v636_v55 = vpop.permute.xlu0 %635 }
 0x153   : > { %v585_v8 = vsel %vm339_vm4, %v581_v24, %v1727_v41 }
 0x154   : > { %v590_v44 = vadd.f32 %v585_v8, %v570_v6  ;;  %v729_v8 = vmul.f32 0.516828, %v1518_v13 }
 0x156   : > { %v600_v26 = vmul.f32 %v1663_v18, %v590_v44  ;;  %v638_v45 = vpop.permute.xlu1 %637  ;;  %v683_v15 = vpop.permute.xlu0 %682  ;;  %v730_v44 = vmul.f32 0.516828, %v1601_v47 }
 0x157   : > { %v641_v4 = vsel %vm339_vm4, %v636_v55, %v638_v45  ;;  %v642_v61 = vsel %vm339_vm4, %v638_v45, %v1736_v0 }
 0x158   : > { %v646_v48 = vadd.f32 %v641_v4, %v632_v2  ;;  %v647_v41 = vadd.f32 %v642_v61, %v633_v10  ;;  %v610_v49 = vadd.f32 %v1672_v21, %v600_v26 }
 0x15a   : > { %v656_v32 = vmul.f32 %v1654_v14, %v646_v48  ;;  %v657_v33 = vmul.f32 %v1654_v14, %v647_v41  ;;  %v579_v58 = vpop.permute.xlu1 %578  ;;  %v613_v0 = vmax.f32 %v610_v49, 0.0  ;;  %v741_v16 = vpop.permute.xlu0 %740 }
 0x15b   : > { %v584_v57 = vsel %vm339_vm4, %v579_v58, %v581_v24 }
 0x15c   : > { %v589_v56 = vadd.f32 %v584_v57, %v569_v37  ;;  %v667_v29 = vadd.f32 %v1665_v19, %v657_v33  ;;  %v666_v31 = vadd.f32 %v1665_v19, %v656_v32  ;;  %v731_v19 = vmul.f32 0.516828, %v1590_v43 }
 0x15e   : > { %v599_v3 = vmul.f32 %v1663_v18, %v589_v56  ;;  %v670_v27 = vmax.f32 %v667_v29, 0.0  ;;  %v669_v40 = vmax.f32 %v666_v31, 0.0  ;;  %v681_v53 = vpop.permute.xlu1 %680  ;;  %v691_v18 = vadd.f32 %v683_v15, %v1599_v46 }
 0x15f   : > { %v685_v36 = vsel %vm324_vm3, %v681_v53, %v683_v15 }
 0x160   : > { %v1159_v38 = vpack.c.bf16 %v670_v27, %v613_v0  ;;  %v609_v52 = vadd.f32 %v1672_v21, %v599_v3  ;;  %v690_v50 = vadd.f32 %v685_v36, %v1616_v54 }
 0x162   : > { %1160 = vmatprep.subr.bf16.mxu0 %v1159_v38  ;;  %v612_v14 = vmax.f32 %v609_v52, 0.0 }
 0x164   : > { %v1161_v20 = vpack.c.bf16 %v669_v40, %v612_v14 }
 0x166   : > { %1162 = vmatpush1.bf16.msra.mxu0 %v1161_v20 }
 0x16b   : > { %v787_v5 = vpop.permute.xlu0 %786 }
 0x16f   : > { %v721_v23 = vpop.permute.xlu1 %720  ;;  %v739_v30 = vpop.permute.xlu0 %738 }
 0x170   : > { %v744_v24 = vsel %vm324_vm3, %v739_v30, %v741_v16 }
 0x171   : > { %v749_v26 = vadd.f32 %v744_v24, %v729_v8 }
 0x173   : > { %v743_v9 = vpop.permute.xlu1 %742  ;;  %v697_v1 = vpop.permute.xlu0 %696 }
 0x174   : > { %v705_v28 = vadd.f32 %v697_v1, %v691_v18  ;;  %v751_v34 = vadd.f32 %v743_v9, %v731_v19  ;;  %v745_v43 = vsel %vm324_vm3, %v741_v16, %v743_v9 }
 0x175   : > { %v750_v45 = vadd.f32 %v745_v43, %v730_v44 }
 0x176   : > { %v715_v21 = vmul.f32 %v1681_v25, %v705_v28 }
 0x177   : > { %v763_v35 = vpop.permute.xlu0 %762  ;;  %v679_v51 = vpop.permute.xlu1 %678 }
 0x178   : > { %v771_v39 = vadd.f32 %v763_v35, %v751_v34  ;;  %v725_v17 = vadd.f32 %v721_v23, %v715_v21  ;;  %v684_v60 = vsel %vm324_vm3, %v679_v51, %v681_v53 }
 0x179   : > { %v689_v47 = vadd.f32 %v684_v60, %v1641_v7 }
 0x17a   : > { %v781_v62 = vmul.f32 %v1675_v22, %v771_v39  ;;  %v728_v2 = vmax.f32 %v725_v17, 0.0 }
 0x17b   : > { %v759_v63 = vpop.permute.xlu0 %758  ;;  %v695_v6 = vpop.permute.xlu1 %694 }
 0x17c   : > { %v791_v11 = vadd.f32 %v787_v5, %v781_v62  ;;  %v699_v12 = vsel %vm339_vm4, %v695_v6, %v697_v1 }
 0x17d   : > { %v704_v10 = vadd.f32 %v699_v12, %v690_v50 }
 0x17e   : > { %v794_v55 = vmax.f32 %v791_v11, 0.0 }
 0x17f   : > { %v714_v59 = vmul.f32 %v1681_v25, %v704_v10  ;;  %v804_v4 = vpop.permute.xlu0 %803  ;;  %v761_v61 = vpop.permute.xlu1 %760 }
 0x180   : > { %v764_v48 = vsel %vm339_vm4, %v759_v63, %v761_v61  ;;  %v765_v41 = vsel %vm339_vm4, %v761_v61, %v763_v35  ;;  %v1177_v37 = vpack.c.bf16 %v794_v55, %v728_v2 }
 0x181   : > { %v769_v32 = vadd.f32 %v764_v48, %v749_v26  ;;  %v770_v13 = vadd.f32 %v765_v41, %v750_v45  ;;  %v724_v56 = vadd.f32 %v721_v23, %v714_v59 }
 0x182   : > { %1178 = vmatpush3.bf16.msra.mxu1 %v1177_v37 }
 0x183   : > { %v779_v33 = vmul.f32 %v1675_v22, %v769_v32  ;;  %v780_v58 = vmul.f32 %v1675_v22, %v770_v13  ;;  %v844_v49 = vpop.permute.xlu0 %843  ;;  %v693_v57 = vpop.permute.xlu1 %692  ;;  %1146 = vmatprep.subr.mxu1 %v1302_v42  ;;  %v727_v38 = vmax.f32 %v724_v56, 0.0 }
 0x184   : > { %v698_v29 = vsel %vm339_vm4, %v693_v57, %v695_v6 }
 0x185   : > { %v703_v3 = vadd.f32 %v698_v29, %v689_v47  ;;  %v790_v0 = vadd.f32 %v787_v5, %v780_v58  ;;  %v789_v15 = vadd.f32 %v787_v5, %v779_v33 }
 0x187   : > { %v713_v27 = vmul.f32 %v1681_v25, %v703_v3  ;;  %v834_v31 = vpop.permute.xlu1 %833  ;;  %v793_v52 = vmax.f32 %v790_v0, 0.0  ;;  %v818_v14 = vpop.permute.xlu0 %817  ;;  %v792_v53 = vmax.f32 %v789_v15, 0.0 }
 0x189   : > { %v1163_v40 = vpack.c.bf16 %v793_v52, %v727_v38  ;;  %v723_v20 = vadd.f32 %v721_v23, %v713_v27 }
 0x18b   : > { %1164 = vmatprep.subr.bf16.mxu0 %v1163_v40  ;;  %v806_v22 = vpop.permute.xlu1 %805  ;;  %v726_v16 = vmax.f32 %v723_v20, 0.0  ;;  %v816_v18 = vpop.permute.xlu0 %815 }
 0x18c   : > { %v808_v9 = vsel %vm324_vm3, %v804_v4, %v806_v22  ;;  %v821_v19 = vsel %vm339_vm4, %v816_v18, %v818_v14  ;;  %v814_v5 = vadd.f32 %v806_v22, %v1599_v46  ;;  %v852_v46 = vld [vmem:[%s1892_s3] sm:$0xff] }
 0x18d   : > { %v1165_v30 = vpack.c.bf16 %v792_v53, %v726_v16  ;;  %v813_v23 = vadd.f32 %v808_v9, %v1616_v54 }
 0x18f   : > { %1166 = vmatpush1.bf16.msra.mxu0 %v1165_v30  ;;  %v802_v42 = vpop.permute.xlu1 %801  ;;  %v859_v11 = vpop.permute.xlu0 %858 }
 0x190   : > { %v807_v1 = vsel %vm324_vm3, %v802_v42, %v804_v4 }
 0x191   : > { %v812_v25 = vadd.f32 %v807_v1, %v1641_v7 }
 0x193   : > { %v826_v28 = vadd.f32 %v821_v19, %v812_v25  ;;  %v820_v34 = vpop.permute.xlu1 %819 }
 0x194   : > { %v822_v21 = vsel %vm339_vm4, %v818_v14, %v820_v34  ;;  %v828_v35 = vadd.f32 %v820_v34, %v814_v5 }
 0x195   : > { %v827_v51 = vadd.f32 %v822_v21, %v813_v23  ;;  %v836_v36 = vmul.f32 %v834_v31, %v826_v28 }
 0x196   : > { %v838_v39 = vmul.f32 %v834_v31, %v828_v35 }
 0x197   : > { %v837_v17 = vmul.f32 %v834_v31, %v827_v51  ;;  %v846_v50 = vadd.f32 %v844_v49, %v836_v36  ;;  %v857_v24 = vpop.permute.xlu1 %856 }
 0x198   : > { %v848_v62 = vadd.f32 %v844_v49, %v838_v39  ;;  %v863_v2 = vsel %vm862_vm6, %v857_v24, %v859_v11 }
 0x199   : > { %v847_v63 = vadd.f32 %v844_v49, %v837_v17  ;;  %v849_v6 = vmax.f32 %v846_v50, 0.0 }
 0x19a   : > { %v851_v7 = vmax.f32 %v848_v62, 0.0 }
 0x19b   : > { %v850_v54 = vmax.f32 %v847_v63, 0.0  ;;  %v861_v43 = vpop.permute.xlu1 %860 }
 0x19c   : > { %1147 = vmatpush3.msra.mxu1 %v851_v7  ;;  %v864_v44 = vsel %vm862_vm6, %v859_v11, %v861_v43 }
 0x19d   : > { %888 = vmatprep.subr.mxu0 %v850_v54  ;;  %1149 = vmatmul.mubr.msk.f32.vlgmr.msra.gmra.mrb[0].mxu1 %vm868_vm5, %v852_v46 }
 0x19e   : > { %889 = vmatpush1.msra.mxu0 %v849_v6 }
 0x19f   : > { %1115 = vmatmul.mubr.msk.f32.vlgmr.msra.gmra.mrb[0].mxu0 %vm868_vm5, %v852_v46 }
 0x270   : > { %v1009_v12 = vpop.f32.mrb[0].mxu1 }
 0x271   : > { %v1010_v8 = vadd.f32 %v1009_v12, %v861_v43  ;;  %v1150_v10 = vpop.f32.mrb[1].mxu1 }
 0x272   : > { %v938_v55 = vpop.f32.mrb[0].mxu0 }
 0x273   : > { %v939_v26 = vadd.f32 %v938_v55, %v863_v2  ;;  %v1015_v45 = vmax.f32 %v1010_v8, 0.0  ;;  %v940_v59 = vpop.f32.mrb[1].mxu0 }
 0x274   : > { %v941_v4 = vadd.f32 %v940_v59, %v864_v44 }
 0x275   : > { %v1013_v61 = vmax.f32 %v939_v26, 0.0  ;;  %1019 = vst.msk [vmem:[%s190_s27 + $0x10] sm:$0xff] %vm1018_vm7, %v1015_v45 }
 0x276   : > { %v1014_v60 = vmax.f32 %v941_v4, 0.0 }
 0x277   : > { %1016 = vst [vmem:[%s190_s27] sm:$0xff] %v1013_v61 }
 0x278   : > { %1017 = vst [vmem:[%s190_s27 + $0x8] sm:$0xff] %v1014_v60 }
 0x279   : > { %1245 = shalt.err (!%p1242_p3)
}
 0x27a   : > { %s1246_s10 = scalar_lea.hbm %s1847_s5, 384  ;;  %s1250_s13 = scalar_lea.hbm %s1893_s4, 768 }
 0x27b   : > { %p1247_p4 = scmp.ne.s32.totalorder %s1847_s5, %s1246_s10  ;;  %p1251_p9 = scmp.lt.u32.totalorder %s1847_s5, %s1893_s4 }
 0x27c   : > { %p1252_p10 = scmp.lt.u32.totalorder %s1250_s13, %s1246_s10  ;;  %p1254_p12 = scmp.lt.u32.totalorder %s1246_s10, %s1847_s5 }
 0x27d   : > { %p1248_p7 = pnand %p1247_p4, %p1369_p5 }
 0x27e   : > { %p1253_p11 = por %p1252_p10, %p1251_p9 }
 0x27f   : > { %p1249_p8 = pneg %p1248_p7 }
 0x280   : > { %p1255_p13 = por %p1254_p12, %p1253_p11 }
 0x282   : > { %p1256_p0 = pnand %p1255_p13, %p1249_p8 }
 0x284   : > { %1259 = shalt.err (!%p1256_p0)
}
 0x285   : > { %1182 = dma.vmem_to_hbm [thread:$0]  (%p1369_p5), %s1849_s28, 384, %s1847_s5, %s1021_s19  }
 0x286 PF: > { %p1188_p1 = scmp.ge.s32.totalorder %s1294_s18, 2  ;;  %s1047_s22 = sand.u32 1, %s1282_s15  }
 0x287   : > { %s1048_s23 = scalar_lea.sflag [#allocation3], %s1047_s22 }
 0x288   : > { %p1185_p2 = pnand %p1188_p1, %p1373_p6 }
 0x28a   : > { %1277 = dma.done.wait (!%p1185_p2), %s1048_s23, 384  }
 0x28b   : > { %1279 = vsyncadd (!%p1185_p2), %s1048_s23, 4294966912  ;;  %p14_p3 = scmp.ge.s32.totalorder %s1356_s21, 4   ;;  %s1896_s15 = smov %s1286_s16 }
 0x28c   : > { %s1897_s16 = smov %s1290_s17  ;;  %s1898_s17 = smov %s1367_s24 }
 0x28d   : > { %s1899_s18 = smov %s1356_s21  ;;  %16 = sbr.rel (!%p14_p3) target bundleno = 3 (0x3), region = 87 }
 0x294   :  { %1053 = vsyncpa [#allocation3], 1 }
 0x295   :  { %1055 = vsyncpa [#allocation3 + $0x1], 1 }

</bundles_post_ra>
